<compile_context>
chip_gen: v5e
topology: v5e:2x2
jax: 0.10.0
libtpu: 0.0.40
codegen_flags: <defaults>
</compile_context>

<pallas_src>
import jax
import jax.numpy as jnp
from jax import lax
from jax.experimental import pallas as pl
from jax.experimental.pallas import tpu as pltpu
import numpy as np


def _round_up(x, m):
    return (x + m - 1) // m * m


def _snt_attention_kernel(lens_ref,                      # (TB, 1)  int32
                          h_ref, x_ref,                  # (TB, H), (TB, S, D2)
                          wa_ref, ua_ref, va_ref,        # (H, H), (D2, H), (1, H)
                          wc_ref, bc_ref,                # (D2, Cp), (1, Cp)
                          logsm_ref, sm_ref):            # outs: (TB, Cp) each
    TB, S, D2 = x_ref.shape
    H = ua_ref.shape[1]

    h = h_ref[...]                                       # (TB, H)
    x = x_ref[...]                                       # (TB, S, D2)

    # c1 = Wa(h_t); c2 = Ua(lstm_out)  (1x1 conv == channel matmul; weights are
    # pre-transposed to (in, out) so every matmul is `rows @ W`).
    c1 = jnp.dot(h, wa_ref[...], preferred_element_type=jnp.float32)        # (TB, H)
    c2 = jnp.dot(x.reshape(TB * S, D2), ua_ref[...],
                 preferred_element_type=jnp.float32).reshape(TB, S, H)       # (TB, S, H)
    c4 = jnp.tanh(c1[:, None, :] + c2)                                       # (TB, S, H) f32

    # Va projection as VPU multiply + lane reduce over H -> (TB, S); keeps S on
    # the lane axis for the sequence softmax (no N=1 MXU matmul).
    e = jnp.sum(c4 * va_ref[...], axis=-1)                                   # (TB, S) f32

    # mask positions >= lens[b] with -inf (torch masked_fill_), softmax over S
    pos = lax.broadcasted_iota(jnp.int32, (TB, S), 1)
    e = jnp.where(pos < lens_ref[...], e, -jnp.inf)
    m = jnp.max(e, axis=-1, keepdims=True)
    p = jnp.exp(e - m)
    a = p / jnp.sum(p, axis=-1, keepdims=True)                               # (TB, S)

    # context_hidden[b] = sum_t a[b,t] * lstm_out[b,t,:]  (VPU mul + sublane reduce)
    ctx = jnp.sum(a[:, :, None] * x, axis=1)                                 # (TB, D2) f32

    # hidden2class: padded class columns carry bias = -inf, so they contribute
    # exp(-inf)=0 to the class softmax and are sliced off in the wrapper.
    cls = jnp.dot(ctx, wc_ref[...], preferred_element_type=jnp.float32) + bc_ref[...]

    mc = jnp.max(cls, axis=-1, keepdims=True)
    ex = jnp.exp(cls - mc)
    se = jnp.sum(ex, axis=-1, keepdims=True)
    sm_ref[...] = (ex / se).astype(sm_ref.dtype)
    logsm_ref[...] = (cls - mc - jnp.log(se)).astype(logsm_ref.dtype)


def snt_classifier_hidden_attention(enc_h_t, lstm_out, lens, params,
                                    num_layers=1, bidirectional=True, block_b=128):
    """Returns (class_scores=log_softmax, class_softmax), each (B, class_size) f32."""
    B, S, D2 = lstm_out.shape
    H = params["Wa"].shape[0]
    C = params["hidden2class_w"].shape[0]

    # torch.index_select(enc_h_t, 0, [2*num_layers-1]).squeeze(0)
    h_t = enc_h_t[2 * num_layers - 1] if bidirectional else enc_h_t[0]      # (B, H)

    # Keep caller dtype for the mem-bound streams/weights (no forced f32 upcast).
    in_dt = lstm_out.dtype

    # Batch tile: multiple of 8 sublanes, up to block_b; pad B so the grid divides.
    TB = min(block_b, _round_up(max(B, 1), 8))
    B_pad = _round_up(B, TB)
    C_pad = _round_up(max(C, 1), 128)        # lane-dense output stores

    def pad_rows(arr, rows, value=0):
        extra = rows - arr.shape[0]
        if extra == 0:
            return arr
        return jnp.pad(arr, ((0, extra),) + ((0, 0),) * (arr.ndim - 1),
                       constant_values=value)

    h = pad_rows(h_t.astype(in_dt), B_pad)                                   # (B_pad, H)
    x = pad_rows(lstm_out, B_pad)                                            # (B_pad, S, D2)
    lens_i32 = jnp.asarray(lens, jnp.int32).reshape(B, 1)
    lens_i32 = pad_rows(lens_i32, B_pad, value=S)    # pad rows keep full length (no NaN rows)

    # Pre-transpose weights to (in, out); classifier padded to lane-dense C_pad.
    wa_t = params["Wa"].T.astype(in_dt)                                      # (H, H)
    ua_t = params["Ua"][:, :, 0].T.astype(in_dt)                             # (D2, H)
    va_r = params["Va"][:, :, 0].astype(jnp.float32)                         # (1, H)
    wc_t = jnp.zeros((D2, C_pad), in_dt).at[:, :C].set(
        params["hidden2class_w"].T.astype(in_dt))                            # (D2, C_pad)
    bc_p = jnp.full((1, C_pad), -jnp.inf, jnp.float32).at[:, :C].set(
        params["hidden2class_b"].astype(jnp.float32))                        # (1, C_pad)

    nb = B_pad // TB
    grid_spec = pltpu.PrefetchScalarGridSpec(
        num_scalar_prefetch=0,
        grid=(nb,),
        in_specs=[
            pl.BlockSpec((TB, 1),     lambda b: (b, 0)),      # lens
            pl.BlockSpec((TB, H),     lambda b: (b, 0)),      # h_t
            pl.BlockSpec((TB, S, D2), lambda b: (b, 0, 0)),   # lstm_out
            pl.BlockSpec((H, H),      lambda b: (0, 0)),      # Wa^T
            pl.BlockSpec((D2, H),     lambda b: (0, 0)),      # Ua^T
            pl.BlockSpec((1, H),      lambda b: (0, 0)),      # Va
            pl.BlockSpec((D2, C_pad), lambda b: (0, 0)),      # hidden2class W^T (padded)
            pl.BlockSpec((1, C_pad),  lambda b: (0, 0)),      # bias (-inf padded)
        ],
        out_specs=[
            pl.BlockSpec((TB, C_pad), lambda b: (b, 0)),
            pl.BlockSpec((TB, C_pad), lambda b: (b, 0)),
        ],
    )

    logsm, sm = pl.pallas_call(
        _snt_attention_kernel,
        grid_spec=grid_spec,
        out_shape=(jax.ShapeDtypeStruct((B_pad, C_pad), jnp.float32),
                   jax.ShapeDtypeStruct((B_pad, C_pad), jnp.float32)),
        compiler_params=pltpu.CompilerParams(
            dimension_semantics=("parallel",),
            # Above the 32 MiB scoped default (v6e), below v7x's 64 MiB physical.
            vmem_limit_bytes=56 * 1024 * 1024,
        ),
    )(lens_i32, h, x, wa_t, ua_t, va_r, wc_t, bc_p)

    return logsm[:B, :C], sm[:B, :C]


def _reference(enc_h_t, lstm_out, lens, params):
    """Pure-JAX reference of the PyTorch forward (dropout p=0 -> identity)."""
    B, S, D2 = lstm_out.shape
    h_t = enc_h_t[1]                                                    # (B, H)
    c1 = h_t @ params["Wa"].T                                           # (B, H)
    c2 = jnp.einsum("bsd,hd->bsh", lstm_out, params["Ua"][:, :, 0])     # (B, S, H)
    c4 = jnp.tanh(c1[:, None, :] + c2)
    e = jnp.einsum("bsh,h->bs", c4, params["Va"][0, :, 0])              # (B, S)
    mask = jnp.arange(S)[None, :] >= jnp.asarray(lens)[:, None]
    e = jnp.where(mask, -jnp.inf, e)
    a = jax.nn.softmax(e, axis=1)
    ctx = jnp.einsum("bs,bsd->bd", a, lstm_out)                         # (B, D2)
    cls = ctx @ params["hidden2class_w"].T + params["hidden2class_b"]
    return jax.nn.log_softmax(cls, axis=1), jax.nn.softmax(cls, axis=1)


if __name__ == "__main__":
    # small shapes consistent with the module
    B, S, H, C = 2, 8, 32, 5
    num_layers, num_directions = 1, 2
    D2 = num_directions * H

    key = jax.random.PRNGKey(0)
    k = jax.random.split(key, 8)

    # "LSTM" outputs (synthetic — the module consumes them, it does not run an LSTM)
    enc_h_t = jax.random.normal(k[0], (num_layers * num_directions, B, H), jnp.float32)
    enc_c_t = jax.random.normal(k[1], (num_layers * num_directions, B, H), jnp.float32)  # unused
    lstm_out = jax.random.normal(k[2], (B, S, D2), jnp.float32)
    lens = [S, 5]  # max(lens) == seqlen, as the PyTorch mask construction requires

    # deterministic parameter init mirroring init_weights(initrange=0.2)
    initrange = 0.2
    params = {
        "Wa": jax.random.uniform(k[3], (H, H), jnp.float32, -initrange, initrange),
        "Ua": jax.random.uniform(k[4], (H, D2, 1), jnp.float32, -initrange, initrange),
        "Va": jax.random.uniform(k[5], (1, H, 1), jnp.float32, -initrange, initrange),
        "hidden2class_w": jax.random.uniform(k[6], (C, D2), jnp.float32, -initrange, initrange),
        "hidden2class_b": jax.random.uniform(k[7], (C,), jnp.float32, -initrange, initrange),
    }

    class_scores, class_softmax = snt_classifier_hidden_attention(
        enc_h_t, lstm_out, lens, params, num_layers=num_layers, bidirectional=True)
    jax.block_until_ready((class_scores, class_softmax))

    ref_scores, ref_softmax = _reference(enc_h_t, lstm_out, lens, params)
    np.testing.assert_allclose(np.asarray(class_scores), np.asarray(ref_scores),
                               rtol=1e-5, atol=1e-5)
    np.testing.assert_allclose(np.asarray(class_softmax), np.asarray(ref_softmax),
                               rtol=1e-5, atol=1e-5)

    print("KERNEL_OK")
</pallas_src>

<mosaic_0001>
module attributes {stable_mosaic.version = 11 : i64} {
  func.func @_snt_attention_kernel(%arg0: i32, %arg1: memref<8x1xi32, #tpu.memory_space<vmem>>, %arg2: memref<8x32xf32, #tpu.memory_space<vmem>>, %arg3: memref<8x8x64xf32, #tpu.memory_space<vmem>>, %arg4: memref<32x32xf32, #tpu.memory_space<vmem>>, %arg5: memref<64x32xf32, #tpu.memory_space<vmem>>, %arg6: memref<1x32xf32, #tpu.memory_space<vmem>>, %arg7: memref<64x128xf32, #tpu.memory_space<vmem>>, %arg8: memref<1x128xf32, #tpu.memory_space<vmem>>, %arg9: memref<8x128xf32, #tpu.memory_space<vmem>>, %arg10: memref<8x128xf32, #tpu.memory_space<vmem>>) attributes {dimension_semantics = [#tpu.dimension_semantics<parallel>], iteration_bounds = array<i64: 1>, scalar_prefetch = 0 : i64, scratch_operands = 0 : i64, tpu.core_type = #tpu.core_type<tc>, window_params = [{transform_indices = @transform_0, window_bounds = array<i64: 8, 1>}, {transform_indices = @transform_1, window_bounds = array<i64: 8, 32>}, {transform_indices = @transform_2, window_bounds = array<i64: 8, 8, 64>}, {pipeline_mode = #tpu.pipeline_mode<synchronous>, transform_indices = @transform_3, window_bounds = array<i64: 32, 32>}, {pipeline_mode = #tpu.pipeline_mode<synchronous>, transform_indices = @transform_4, window_bounds = array<i64: 64, 32>}, {pipeline_mode = #tpu.pipeline_mode<synchronous>, transform_indices = @transform_5, window_bounds = array<i64: 1, 32>}, {pipeline_mode = #tpu.pipeline_mode<synchronous>, transform_indices = @transform_6, window_bounds = array<i64: 64, 128>}, {pipeline_mode = #tpu.pipeline_mode<synchronous>, transform_indices = @transform_7, window_bounds = array<i64: 1, 128>}, {transform_indices = @transform_8, window_bounds = array<i64: 8, 128>}, {transform_indices = @transform_9, window_bounds = array<i64: 8, 128>}]} {
    %c0 = arith.constant 0 : index
    %c0_0 = arith.constant 0 : index
    %0 = vector.load %arg2[%c0, %c0_0] : memref<8x32xf32, #tpu.memory_space<vmem>>, vector<8x32xf32>
    %c0_1 = arith.constant 0 : index
    %c0_2 = arith.constant 0 : index
    %c0_3 = arith.constant 0 : index
    %1 = vector.load %arg3[%c0_1, %c0_2, %c0_3] : memref<8x8x64xf32, #tpu.memory_space<vmem>>, vector<8x8x64xf32>
    %c0_4 = arith.constant 0 : index
    %c0_5 = arith.constant 0 : index
    %2 = vector.load %arg4[%c0_4, %c0_5] : memref<32x32xf32, #tpu.memory_space<vmem>>, vector<32x32xf32>
    %cst = arith.constant dense<0.000000e+00> : vector<8x32xf32>
    %3 = tpu.matmul %0, %2, %cst {dimension_numbers = #tpu.dot_dimension_numbers<[1], [0], [0], [1], [0, 0, 1, 1], [], []>} : vector<8x32xf32>, vector<32x32xf32>, vector<8x32xf32> -> vector<8x32xf32>
    %4 = vector.shape_cast %1 : vector<8x8x64xf32> to vector<64x64xf32>
    %c0_6 = arith.constant 0 : index
    %c0_7 = arith.constant 0 : index
    %5 = vector.load %arg5[%c0_6, %c0_7] : memref<64x32xf32, #tpu.memory_space<vmem>>, vector<64x32xf32>
    %cst_8 = arith.constant dense<0.000000e+00> : vector<64x32xf32>
    %6 = tpu.matmul %4, %5, %cst_8 {dimension_numbers = #tpu.dot_dimension_numbers<[1], [0], [0], [1], [0, 0, 1, 1], [], []>} : vector<64x64xf32>, vector<64x32xf32>, vector<64x32xf32> -> vector<64x32xf32>
    %7 = vector.shape_cast %6 : vector<64x32xf32> to vector<8x8x32xf32>
    %8 = vector.shape_cast %3 : vector<8x32xf32> to vector<8x1x32xf32>
    %9 = vector.broadcast %8 : vector<8x1x32xf32> to vector<8x8x32xf32>
    %10 = arith.addf %9, %7 : vector<8x8x32xf32>
    %11 = math.tanh %10 : vector<8x8x32xf32>
    %c0_9 = arith.constant 0 : index
    %c0_10 = arith.constant 0 : index
    %12 = vector.load %arg6[%c0_9, %c0_10] : memref<1x32xf32, #tpu.memory_space<vmem>>, vector<1x32xf32>
    %13 = vector.shape_cast %12 : vector<1x32xf32> to vector<1x1x32xf32>
    %14 = vector.broadcast %13 : vector<1x1x32xf32> to vector<8x8x32xf32>
    %15 = arith.mulf %11, %14 : vector<8x8x32xf32>
    %cst_11 = arith.constant dense<0.000000e+00> : vector<8x8xf32>
    %16 = vector.multi_reduction <add>, %15, %cst_11 [2] : vector<8x8x32xf32> to vector<8x8xf32>
    %17 = tpu.iota {dimensions = array<i32: 1>} : vector<8x8xi32>
    %c0_12 = arith.constant 0 : index
    %c0_13 = arith.constant 0 : index
    %18 = vector.load %arg1[%c0_12, %c0_13] : memref<8x1xi32, #tpu.memory_space<vmem>>, vector<8x1xi32>
    %19 = vector.broadcast %18 : vector<8x1xi32> to vector<8x8xi32>
    %20 = arith.cmpi slt, %17, %19 : vector<8x8xi32>
    %cst_14 = arith.constant 0xFF800000 : f32
    %21 = vector.broadcast %cst_14 : f32 to vector<8x8xf32>
    %22 = arith.select %20, %16, %21 : vector<8x8xi1>, vector<8x8xf32>
    %cst_15 = arith.constant dense<0xFF800000> : vector<8xf32>
    %23 = vector.multi_reduction <maximumf>, %22, %cst_15 [1] : vector<8x8xf32> to vector<8xf32>
    %24 = vector.shape_cast %23 : vector<8xf32> to vector<8x1xf32>
    %25 = vector.broadcast %24 : vector<8x1xf32> to vector<8x8xf32>
    %26 = arith.subf %22, %25 : vector<8x8xf32>
    %27 = math.exp %26 : vector<8x8xf32>
    %cst_16 = arith.constant dense<0.000000e+00> : vector<8xf32>
    %28 = vector.multi_reduction <add>, %27, %cst_16 [1] : vector<8x8xf32> to vector<8xf32>
    %29 = vector.shape_cast %28 : vector<8xf32> to vector<8x1xf32>
    %30 = vector.broadcast %29 : vector<8x1xf32> to vector<8x8xf32>
    %31 = arith.divf %27, %30 : vector<8x8xf32>
    %32 = vector.shape_cast %31 : vector<8x8xf32> to vector<8x8x1xf32>
    %33 = vector.broadcast %32 : vector<8x8x1xf32> to vector<8x8x64xf32>
    %34 = arith.mulf %33, %1 : vector<8x8x64xf32>
    %cst_17 = arith.constant dense<0.000000e+00> : vector<8x64xf32>
    %35 = vector.multi_reduction <add>, %34, %cst_17 [1] : vector<8x8x64xf32> to vector<8x64xf32>
    %c0_18 = arith.constant 0 : index
    %c0_19 = arith.constant 0 : index
    %36 = vector.load %arg7[%c0_18, %c0_19] : memref<64x128xf32, #tpu.memory_space<vmem>>, vector<64x128xf32>
    %cst_20 = arith.constant dense<0.000000e+00> : vector<8x128xf32>
    %37 = tpu.matmul %35, %36, %cst_20 {dimension_numbers = #tpu.dot_dimension_numbers<[1], [0], [0], [1], [0, 0, 1, 1], [], []>} : vector<8x64xf32>, vector<64x128xf32>, vector<8x128xf32> -> vector<8x128xf32>
    %c0_21 = arith.constant 0 : index
    %c0_22 = arith.constant 0 : index
    %38 = vector.load %arg8[%c0_21, %c0_22] : memref<1x128xf32, #tpu.memory_space<vmem>>, vector<1x128xf32>
    %39 = vector.broadcast %38 : vector<1x128xf32> to vector<8x128xf32>
    %40 = arith.addf %37, %39 : vector<8x128xf32>
    %cst_23 = arith.constant dense<0xFF800000> : vector<8xf32>
    %41 = vector.multi_reduction <maximumf>, %40, %cst_23 [1] : vector<8x128xf32> to vector<8xf32>
    %42 = vector.shape_cast %41 : vector<8xf32> to vector<8x1xf32>
    %43 = vector.broadcast %42 : vector<8x1xf32> to vector<8x128xf32>
    %44 = arith.subf %40, %43 : vector<8x128xf32>
    %45 = math.exp %44 : vector<8x128xf32>
    %cst_24 = arith.constant dense<0.000000e+00> : vector<8xf32>
    %46 = vector.multi_reduction <add>, %45, %cst_24 [1] : vector<8x128xf32> to vector<8xf32>
    %47 = vector.shape_cast %46 : vector<8xf32> to vector<8x1xf32>
    %48 = vector.broadcast %47 : vector<8x1xf32> to vector<8x128xf32>
    %49 = arith.divf %45, %48 : vector<8x128xf32>
    %c0_25 = arith.constant 0 : index
    %c0_26 = arith.constant 0 : index
    %50 = vector.load %arg10[%c0_25, %c0_26] : memref<8x128xf32, #tpu.memory_space<vmem>>, vector<8x128xf32>
    tpu.vector_store %arg10[%c0_25, %c0_26], %49 {strides = array<i32>} : memref<8x128xf32, #tpu.memory_space<vmem>>, vector<8x128xf32>,
    %51 = vector.broadcast %42 : vector<8x1xf32> to vector<8x128xf32>
    %52 = arith.subf %40, %51 : vector<8x128xf32>
    %53 = math.log %47 : vector<8x1xf32>
    %54 = vector.broadcast %53 : vector<8x1xf32> to vector<8x128xf32>
    %55 = arith.subf %52, %54 : vector<8x128xf32>
    %c0_27 = arith.constant 0 : index
    %c0_28 = arith.constant 0 : index
    %56 = vector.load %arg9[%c0_27, %c0_28] : memref<8x128xf32, #tpu.memory_space<vmem>>, vector<8x128xf32>
    tpu.vector_store %arg9[%c0_27, %c0_28], %55 {strides = array<i32>} : memref<8x128xf32, #tpu.memory_space<vmem>>, vector<8x128xf32>,
    return
  }
  func.func @transform_0(%arg0: i32) -> (i32, i32) {
    %c0_i32 = arith.constant 0 : i32
    %c0_i32_0 = arith.constant 0 : i32
    return %arg0, %c0_i32 : i32, i32
  }
  func.func @transform_1(%arg0: i32) -> (i32, i32) {
    %c0_i32 = arith.constant 0 : i32
    %c0_i32_0 = arith.constant 0 : i32
    return %arg0, %c0_i32 : i32, i32
  }
  func.func @transform_2(%arg0: i32) -> (i32, i32, i32) {
    %c0_i32 = arith.constant 0 : i32
    %c0_i32_0 = arith.constant 0 : i32
    %c0_i32_1 = arith.constant 0 : i32
    return %arg0, %c0_i32, %c0_i32_0 : i32, i32, i32
  }
  func.func @transform_3(%arg0: i32) -> (i32, i32) {
    %c0_i32 = arith.constant 0 : i32
    %c0_i32_0 = arith.constant 0 : i32
    %c0_i32_1 = arith.constant 0 : i32
    return %c0_i32, %c0_i32_0 : i32, i32
  }
  func.func @transform_4(%arg0: i32) -> (i32, i32) {
    %c0_i32 = arith.constant 0 : i32
    %c0_i32_0 = arith.constant 0 : i32
    %c0_i32_1 = arith.constant 0 : i32
    return %c0_i32, %c0_i32_0 : i32, i32
  }
  func.func @transform_5(%arg0: i32) -> (i32, i32) {
    %c0_i32 = arith.constant 0 : i32
    %c0_i32_0 = arith.constant 0 : i32
    %c0_i32_1 = arith.constant 0 : i32
    return %c0_i32, %c0_i32_0 : i32, i32
  }
  func.func @transform_6(%arg0: i32) -> (i32, i32) {
    %c0_i32 = arith.constant 0 : i32
    %c0_i32_0 = arith.constant 0 : i32
    %c0_i32_1 = arith.constant 0 : i32
    return %c0_i32, %c0_i32_0 : i32, i32
  }
  func.func @transform_7(%arg0: i32) -> (i32, i32) {
    %c0_i32 = arith.constant 0 : i32
    %c0_i32_0 = arith.constant 0 : i32
    %c0_i32_1 = arith.constant 0 : i32
    return %c0_i32, %c0_i32_0 : i32, i32
  }
  func.func @transform_8(%arg0: i32) -> (i32, i32) {
    %c0_i32 = arith.constant 0 : i32
    %c0_i32_0 = arith.constant 0 : i32
    return %arg0, %c0_i32 : i32, i32
  }
  func.func @transform_9(%arg0: i32) -> (i32, i32) {
    %c0_i32 = arith.constant 0 : i32
    %c0_i32_0 = arith.constant 0 : i32
    return %arg0, %c0_i32 : i32, i32
  }
}

</mosaic_0001>

<bundles_post_ra>
// kernel: tpu_custom_call.1
= control target key start
LH: loop header
LB: loop body
LE: loop exit
PB: predicated region body
PF: predicated region fallthrough
CT: control target
= control target key end

     0   :  { %15 = vsyncpa [#allocation3], 0  ;;  %s880_s0 = inlined_call_operand.vmem [shape: s32[8,1], index: 0, kind: input, shape index: {}]   ;;  %s881_s1 = inlined_call_operand.vmem [shape: f32[8,32], index: 1, kind: input, shape index: {}]   ;;  %s882_s2 = inlined_call_operand.vmem [shape: f32[8,8,64], index: 2, kind: input, shape index: {}]   ;;  %s883_s3 = inlined_call_operand.vmem [shape: f32[32,32], index: 3, kind: input, shape index: {}]   ;;  %s884_s4 = inlined_call_operand.vmem [shape: f32[64,32], index: 4, kind: input, shape index: {}]   ;;  %s885_s5 = inlined_call_operand.vmem [shape: f32[1,32], index: 5, kind: input, shape index: {}]   ;;  %s886_s6 = inlined_call_operand.hbm [shape: f32[64,128], index: 6, kind: input, shape index: {}]   ;;  %s887_s7 = inlined_call_operand.vmem [shape: f32[1,128], index: 7, kind: input, shape index: {}]   ;;  %s888_s8 = inlined_call_operand.hbm [shape: f32[8,128], index: 8, kind: output, shape index: {0}]   ;;  %s889_s9 = inlined_call_operand.hbm [shape: f32[8,128], index: 9, kind: output, shape index: {1}]  }
   0x1   :  { %16 = vsyncpa [#allocation4], 0 }
   0x2   :  { %17 = vsyncpa [#allocation7], 0  ;;  %s34_s11 = sshll.u32 %s886_s6, 4  ;;  %s671_s12 = smov [#allocation2]   ;;  %s35_s11 = int_to_ptr.hbm [resolvable:$true] %s34_s11 }
   0x3   :  { %s36_s13 = sshll.u32 %s671_s12, 4  ;;  %s672_s14 = smov 128   ;;  %s37_s13 = int_to_ptr.vmem [resolvable:$true] %s36_s13 }
   0x4   :  { %s673_s15 = smov 8  }
   0x5   :  { %42 = dma.hbm_to_vmem [thread:$0]  %s35_s11, 1024, %s37_s13, [#allocation3], %s672_s14, %s672_s14, %s673_s15  }
   0x6   :  { %665 = dma.done.wait [#allocation3], 1024  }
   0x7   :  { %666 = vsyncadd [#allocation3], 4294966272  ;;  %v61_v0 = vld [vmem:[%s883_s3 + $0x18] sm:$0xff]  ;;  %v60_v2 = vld [vmem:[%s883_s3 + $0x10] sm:$0xff]  ;;  %vm62_vm0 = vcmask 261120   ;;  %vm94_vm1 = vcmask 523264  }
   0x8   :  { %v93_v1 = vld [vmem:[%s884_s4 + $0x38] sm:$0xff]  ;;  %78 = vmatpush.msra.mxu2 %v61_v0  ;;  %v92_v3 = vld [vmem:[%s884_s4 + $0x30] sm:$0xff]  ;;  %v59_v4 = vld [vmem:[%s883_s3 + $0x8] sm:$0xff]  ;;  %v674_v33 = vmov 0   ;;  %vm259_vm2 = vcmask 1041409   ;;  %vm261_vm3 = vcmask 1042434  }
   0x9   :  { %127 = vmatpush.msra.mxu0 %v93_v1  ;;  %539 = vmatpush.msra.mxu1 %v93_v1  ;;  %v91_v5 = vld [vmem:[%s884_s4 + $0x28] sm:$0xff]  ;;  %v58_v6 = vld [vmem:[%s883_s3] sm:$0xff]  ;;  %v89_v9 = vld [vmem:[%s884_s4 + $0x18] sm:$0xff]  ;;  %vm263_vm4 = vcmask 1043459   ;;  %vm265_vm5 = vcmask 1044484   ;;  %vm267_vm6 = vcmask 1045509  }
   0xa   :  { %540 = vmatpush.msra.mxu3 %v93_v1  ;;  %79 = vmatpush.msra.mxu2 %v60_v2  ;;  %v90_v7 = vld [vmem:[%s884_s4 + $0x20] sm:$0xff]  ;;  %v88_v10 = vld [vmem:[%s884_s4 + $0x10] sm:$0xff]  ;;  %v87_v11 = vld [vmem:[%s884_s4 + $0x8] sm:$0xff]  ;;  %vm269_vm7 = vcmask 1046534   ;;  %vm271_vm8 = vcmask 1047559   ;;  %vm275_vm10 = vcmask 64512  }
   0xb   :  { %128 = vmatpush.msra.mxu0 %v92_v3  ;;  %541 = vmatpush.msra.mxu1 %v92_v3  ;;  %v49_v8 = vld [vmem:[%s881_s1] sm:$0xff]  ;;  %v778_v14 = vld [vmem:[%s882_s2 + $0x10] sm:$0xff]  ;;  %v783_v15 = vld [vmem:[%s882_s2 + $0x28] sm:$0xff]  ;;  %s675_s3 = smov [#allocation5]   ;;  %s676_s16 = smov [#allocation6]  }
   0xc   :  { %542 = vmatpush.msra.mxu3 %v92_v3  ;;  %80 = vmatpush.msra.mxu2 %v59_v4  ;;  %v86_v12 = vld [vmem:[%s884_s4] sm:$0xff]  ;;  %v794_v16 = vld [vmem:[%s882_s2 + $0x8] sm:$0xff]  ;;  %v799_v17 = vld [vmem:[%s882_s2 + $0x18] sm:$0xff]  ;;  %s501_s14 = sshll.u32 %s675_s3, 4  ;;  %s512_s17 = sshll.u32 %s676_s16, 4  ;;  %s502_s14 = int_to_ptr.vmem [resolvable:$true] %s501_s14  ;;  %s513_s17 = int_to_ptr.vmem [resolvable:$true] %s512_s17 }
   0xd   :  { %129 = vmatpush.msra.mxu0 %v91_v5  ;;  %543 = vmatpush.msra.mxu1 %v91_v5  ;;  %v773_v13 = vld [vmem:[%s882_s2] sm:$0xff]  ;;  %v804_v18 = vld [vmem:[%s882_s2 + $0x30] sm:$0xff]  ;;  %v820_v20 = vld [vmem:[%s882_s2 + $0x38] sm:$0xff] }
   0xe   :  { %544 = vmatpush.msra.mxu3 %v91_v5  ;;  %81 = vmatpush.msra.mxu2 %v58_v6  ;;  %v815_v19 = vld [vmem:[%s882_s2 + $0x20] sm:$0xff] }
   0xf   :  { %130 = vmatpush.msra.mxu0 %v90_v7  ;;  %545 = vmatpush.msra.mxu1 %v90_v7  ;;  %v565_v34 = vld [vmem:[%s885_s5] ss:$0 sm:$0xff] }
  0x10   :  { %546 = vmatpush.msra.mxu3 %v90_v7  ;;  %529 = vmatmul.msk.f32.vlgmr.msra.gmra.mxu2 %vm62_vm0, %v49_v8 }
  0x11   :  { %131 = vmatpush.msra.mxu0 %v89_v9  ;;  %547 = vmatpush.msra.mxu1 %v89_v9 }
  0x12   :  { %548 = vmatpush.msra.mxu3 %v89_v9  ;;  %561 = vset.pattern.permute.xlu2 %v674_v33 }
  0x13   :  { %132 = vmatpush.msra.mxu0 %v88_v10  ;;  %549 = vmatpush.msra.mxu1 %v88_v10 }
  0x14   :  { %550 = vmatpush.msra.mxu3 %v88_v10 }
  0x15   :  { %133 = vmatpush.msra.mxu0 %v87_v11  ;;  %551 = vmatpush.msra.mxu1 %v87_v11 }
  0x16   :  { %552 = vmatpush.msra.mxu3 %v87_v11 }
  0x17   :  { %134 = vmatpush.msra.mxu0 %v86_v12  ;;  %553 = vmatpush.msra.mxu1 %v86_v12 }
  0x18   :  { %554 = vmatpush.msra.mxu3 %v86_v12  ;;  %530 = vmatmul.msk.f32.vlgmr.msra.gmra.mxu0 %vm94_vm1, %v773_v13 }
  0x19   :  { %532 = vmatmul.msk.f32.vlgmr.msra.gmra.mxu1 %vm94_vm1, %v778_v14  ;;  %535 = vmatmul.msk.f32.vlgmr.msra.gmra.mxu3 %vm94_vm1, %v783_v15 }
  0x20   :  { %531 = vmatmul.msk.f32.gmra.mxu0 %vm94_vm1, %v794_v16 }
  0x21   :  { %533 = vmatmul.msk.f32.gmra.mxu1 %vm94_vm1, %v799_v17  ;;  %536 = vmatmul.msk.f32.gmra.mxu3 %vm94_vm1, %v804_v18 }
  0x29   :  { %534 = vmatmul.msk.f32.gmra.mxu1 %vm94_vm1, %v815_v19  ;;  %537 = vmatmul.msk.f32.gmra.mxu3 %vm94_vm1, %v820_v20 }
  0x93   :  { %v83_v21 = vpop.f32.mrf.mxu2 }
  0x94   :  { %v168_v22 = vperm.slane %v83_v21, 0  ;;  %v162_v23 = vrot.slane %v83_v21, 2  ;;  %v165_v26 = vrot.slane %v83_v21, 5  ;;  %v161_v30 = vrot.slane %v83_v21, 1 }
  0x95   :  { %v136_v24 = vpop.f32.mrf.mxu0  ;;  %v163_v31 = vrot.slane %v83_v21, 3  ;;  %v166_v45 = vrot.slane %v83_v21, 6  ;;  %v164_v47 = vrot.slane %v83_v21, 4  ;;  %v167_v62 = vrot.slane %v83_v21, 7 }
  0x96   :  { %v142_v25 = vpop.f32.mrf.mxu1  ;;  %v184_v27 = vadd.f32 %v168_v22, %v136_v24  ;;  %v170_v28 = vperm.slane %v162_v23, 0  ;;  %v173_v32 = vperm.slane %v165_v26, 0  ;;  %v169_v36 = vperm.slane %v161_v30, 0  ;;  %v238_v23 = vld [vmem:[%s880_s0] sm:$0xff] }
  0x97   :  { %v171_v37 = vperm.slane %v163_v31, 0  ;;  %v174_v50 = vperm.slane %v166_v45, 0  ;;  %v172_v53 = vperm.slane %v164_v47, 0  ;;  %v175_v2 = vperm.slane %v167_v62, 0 }
  0x98   :  { %567 = vtanh.f32 %v184_v27  ;;  %v186_v29 = vadd.f32 %v170_v28, %v142_v25  ;;  %v236_v26 = vlaneseq }
  0x9a   :  { %569 = vtanh.f32 %v186_v29  ;;  %v237_v27 = vand.u32 127, %v236_v26 }
  0x9c   :  { %v151_v35 = vpop.f32.mrf.mxu3 }
  0x9d   :  { %v189_v38 = vadd.f32 %v173_v32, %v151_v35  ;;  %v139_v39 = vpop.f32.mrf.mxu0 }
  0x9e   :  { %v145_v40 = vpop.f32.mrf.mxu1  ;;  %v568_v41 = vpop.eup %567  ;;  %v185_v42 = vadd.f32 %v169_v36, %v139_v39 }
  0x9f   :  { %v187_v43 = vadd.f32 %v171_v37, %v145_v40  ;;  %571 = vtanh.f32 %v189_v38  ;;  %v204_v44 = vmul.f32 %v568_v41, %v565_v34 }
  0xa0   :  { %v570_v46 = vpop.eup %569  ;;  %573 = vtanh.f32 %v185_v42 }
  0xa1   :  { %575 = vtanh.f32 %v187_v43  ;;  %v212_v48 = vsel %vm62_vm0, %v204_v44, 0.0  ;;  %v206_v49 = vmul.f32 %v570_v46, %v565_v34 }
  0xa2   :  { %213 = vadd.xlane.f32.xlu0 %v212_v48 }
  0xa3   :  { %v218_v51 = vsel %vm62_vm0, %v206_v49, 0.0 }
  0xa4   :  { %v154_v52 = vpop.f32.mrf.mxu3  ;;  %219 = vadd.xlane.f32.xlu1 %v218_v51 }
  0xa5   :  { %v572_v54 = vpop.eup %571  ;;  %v190_v55 = vadd.f32 %v174_v50, %v154_v52 }
  0xa6   :  { %v148_v56 = vpop.f32.mrf.mxu1  ;;  %v574_v57 = vpop.eup %573  ;;  %v209_v59 = vmul.f32 %v572_v54, %v565_v34 }
  0xa7   :  { %v188_v58 = vadd.f32 %v172_v53, %v148_v56  ;;  %v576_v60 = vpop.eup %575  ;;  %577 = vtanh.f32 %v190_v55  ;;  %v205_v61 = vmul.f32 %v574_v57, %v565_v34  ;;  %v302_v57 = vshrl.u32 %v236_v26, 7  ;;  %v425_v26 = vld [vmem:[#allocation2 + $0x28] sm:$0xff] }
  0xa8   :  { %v227_v63 = vsel %vm62_vm0, %v209_v59, 0.0  ;;  %v207_v0 = vmul.f32 %v576_v60, %v565_v34 }
  0xa9   :  { %579 = vtanh.f32 %v188_v58  ;;  %228 = vadd.xlane.f32.xlu2 %v227_v63  ;;  %v215_v1 = vsel %vm62_vm0, %v205_v61, 0.0  ;;  %563 = vset.pattern.permute.xlu1 %v302_v57 }
  0xaa   :  { %216 = vadd.xlane.f32.xlu0 %v215_v1  ;;  %v221_v3 = vsel %vm62_vm0, %v207_v0, 0.0 }
  0xab   :  { %562 = vset.pattern.permute.xlu0 %v302_v57 }
  0xac   :  { %v157_v4 = vpop.f32.mrf.mxu3  ;;  %222 = vadd.xlane.f32.xlu1 %v221_v3 }
  0xad   :  { %v578_v5 = vpop.eup %577  ;;  %v191_v6 = vadd.f32 %v175_v2, %v157_v4 }
  0xae   :  { %v210_v8 = vmul.f32 %v578_v5, %v565_v34 }
  0xaf   :  { %v580_v7 = vpop.eup %579  ;;  %581 = vtanh.f32 %v191_v6 }
  0xb0   :  { %v208_v9 = vmul.f32 %v580_v7, %v565_v34  ;;  %v230_v11 = vsel %vm62_vm0, %v210_v8, 0.0 }
  0xb2   :  { %v224_v10 = vsel %vm62_vm0, %v208_v9, 0.0  ;;  %231 = vadd.xlane.f32.xlu0 %v230_v11 }
  0xb3   :  { %225 = vadd.xlane.f32.xlu2 %v224_v10 }
  0xb5   :  { %v582_v12 = vpop.eup %581 }
  0xb6   :  { %v211_v21 = vmul.f32 %v582_v12, %v565_v34 }
  0xb8   :  { %v233_v22 = vsel %vm62_vm0, %v211_v21, 0.0 }
  0xb9   :  { %234 = vadd.xlane.f32.xlu1 %v233_v22 }
  0xcb   :  { %240 = vperm.xlu2 %561, %v238_v23  }
  0xd3   :  { %564 = vset.pattern.permute.xlu2 %v302_v57 }
 0x115   :  { %v214_v24 = vpop.xlane.xlu0 %213 }
 0x116   :  { %v251_v31 = vperm.slane %v214_v24, %v237_v27  ;;  %v427_v24 = vld [vmem:[#allocation2 + $0x38] sm:$0xff] }
 0x117   :  { %v220_v25 = vpop.xlane.xlu1 %219  ;;  %457 = vmatpush.msrb.mxu2 %v427_v24 }
 0x118   :  { %v253_v34 = vperm.slane %v220_v25, %v237_v27  ;;  %v426_v25 = vld [vmem:[#allocation2 + $0x30] sm:$0xff] }
 0x119   :  { %458 = vmatpush.msrb.mxu2 %v426_v25 }
 0x11b   :  { %459 = vmatpush.msrb.mxu2 %v425_v26 }
 0x11c   :  { %v229_v28 = vpop.xlane.xlu2 %228 }
 0x11d   :  { %v217_v29 = vpop.xlane.xlu0 %216  ;;  %v256_v41 = vperm.slane %v229_v28, %v237_v27 }
 0x11e   :  { %v252_v30 = vperm.slane %v217_v29, %v237_v27  ;;  %v424_v29 = vld [vmem:[#allocation2 + $0x20] sm:$0xff] }
 0x11f   :  { %v223_v32 = vpop.xlane.xlu1 %222  ;;  %460 = vmatpush.msrb.mxu2 %v424_v29 }
 0x120   :  { %v260_v33 = vsel %vm259_vm2, %v252_v30, %v251_v31  ;;  %v254_v35 = vperm.slane %v223_v32, %v237_v27  ;;  %v423_v30 = vld [vmem:[#allocation2 + $0x18] sm:$0xff] }
 0x121   :  { %v262_v36 = vsel %vm261_vm3, %v253_v34, %v260_v33  ;;  %461 = vmatpush.msrb.mxu2 %v423_v30  ;;  %v422_v33 = vld [vmem:[#allocation2 + $0x10] sm:$0xff] }
 0x122   :  { %v264_v39 = vsel %vm263_vm4, %v254_v35, %v262_v36  ;;  %v421_v35 = vld [vmem:[#allocation2 + $0x8] sm:$0xff]  ;;  %v420_v36 = vld [vmem:[#allocation2] sm:$0xff] }
 0x123   :  { %462 = vmatpush.msrb.mxu2 %v422_v33 }
 0x125   :  { %v232_v42 = vpop.xlane.xlu0 %231  ;;  %463 = vmatpush.msrb.mxu2 %v421_v35 }
 0x126   :  { %v226_v37 = vpop.xlane.xlu2 %225  ;;  %v257_v44 = vperm.slane %v232_v42, %v237_v27 }
 0x127   :  { %v255_v38 = vperm.slane %v226_v37, %v237_v27  ;;  %464 = vmatpush.msrb.mxu2 %v420_v36 }
 0x129   :  { %v266_v40 = vsel %vm265_vm5, %v255_v38, %v264_v39 }
 0x12a   :  { %v268_v43 = vsel %vm267_vm6, %v256_v41, %v266_v40 }
 0x12b   :  { %v270_v48 = vsel %vm269_vm7, %v257_v44, %v268_v43 }
 0x12c   :  { %v235_v45 = vpop.xlane.xlu1 %234 }
 0x12d   :  { %v258_v46 = vperm.slane %v235_v45, %v237_v27 }
 0x12e   :  { %v241_v47 = vpop.permute.xlu2 %240 }
 0x12f   :  { %vm242_vm9 = vcmp.lt.s32.totalorder %v237_v27, %v241_v47  ;;  %v272_v49 = vsel %vm271_vm8, %v258_v46, %v270_v48 }
 0x130   :  { %v274_v50 = vsel %vm242_vm9, %v272_v49, -inf }
 0x131   :  { %v276_v51 = vsel %vm275_vm10, %v274_v50, -inf }
 0x132   :  { %277 = vmax.xlane.f32.xlu0 %v276_v51 }
 0x1a5   :  { %v278_v52 = vpop.xlane.xlu0 %277 }
 0x1a6   :  { %v279_v53 = vsub.f32 %v274_v50, %v278_v52 }
 0x1a8   :  { %v280_v54 = vmul.f32 1.442695, %v279_v53 }
 0x1aa   :  { %583 = vpow2.f32 %v280_v54 }
 0x1b0   :  { %v584_v55 = vpop.eup %583 }
 0x1b1   :  { %v282_v56 = vsel %vm275_vm10, %v584_v55, 0.0 }
 0x1b2   :  { %283 = vadd.xlane.f32.xlu1 %v282_v56 }
 0x225   :  { %v284_v58 = vpop.xlane.xlu1 %283 }
 0x226   :  { %585 = vrcp.f32 %v284_v58  ;;  %v296_v62 = vand.u32 2147483648, %v284_v58  ;;  %v294_v0 = vand.u32 2147483647, %v284_v58  ;;  %vm290_vm12 = vweird.f32 %v284_v58 }
 0x228   :  { %v297_v2 = vor.u32 1.1754944e-38, %v296_v62  ;;  %vm295_vm14 = vcmp.eq.f32.partialorder %v294_v0, 8.507059e+37 }
 0x22c   :  { %v586_v59 = vpop.eup %585 }
 0x22d   :  { %v286_v60 = vmul.f32 %v586_v59, %v284_v58  ;;  %vm291_vm11 = vweird.f32 %v586_v59 }
 0x22e   :  { %vm292_vm13 = vmor %vm290_vm12, %vm291_vm11 }
 0x22f   :  { %v287_v61 = vsub.f32 1.0, %v286_v60 }
 0x231   :  { %v288_v63 = vmul.f32 %v586_v59, %v287_v61 }
 0x233   :  { %v289_v1 = vadd.f32 %v586_v59, %v288_v63 }
 0x235   :  { %v293_v3 = vsel %vm292_vm13, %v586_v59, %v289_v1 }
 0x236   :  { %v298_v4 = vsel %vm295_vm14, %v297_v2, %v293_v3 }
 0x237   :  { %v299_v5 = vmul.f32 %v584_v55, %v298_v4 }
 0x239   :  { %v314_v6 = vperm.slane %v299_v5, 2  ;;  %v307_v7 = vperm.slane %v299_v5, 1  ;;  %v300_v8 = vperm.slane %v299_v5, 0  ;;  %v321_v9 = vperm.slane %v299_v5, 3 }
 0x23a   :  { %v335_v10 = vperm.slane %v299_v5, 5  ;;  %v328_v11 = vperm.slane %v299_v5, 4  ;;  %v349_v12 = vperm.slane %v299_v5, 7  ;;  %v342_v21 = vperm.slane %v299_v5, 6 }
 0x23b   :  { %319 = vperm.xlu2 %564, %v314_v6   ;;  %312 = vperm.xlu1 %563, %v307_v7  }
 0x23c   :  { %305 = vperm.xlu0 %562, %v300_v8  }
 0x243   :  { %326 = vperm.xlu2 %564, %v321_v9   ;;  %340 = vperm.xlu1 %563, %v335_v10  }
 0x24b   :  { %333 = vperm.xlu2 %564, %v328_v11   ;;  %354 = vperm.xlu1 %563, %v349_v12  }
 0x253   :  { %347 = vperm.xlu2 %564, %v342_v21  }
 0x295   :  { %v320_v22 = vpop.permute.xlu2 %319 }
 0x296   :  { %v358_v27 = vmul.f32 %v320_v22, %v778_v14 }
 0x298   :  { %v378_v32 = vsel %vm94_vm1, %v358_v27, 0.0 }
 0x299   :  { %v379_v37 = vrot.slane %v378_v32, 4 }
 0x29d   :  { %v327_v23 = vpop.permute.xlu2 %326 }
 0x29e   :  { %v359_v31 = vmul.f32 %v327_v23, %v799_v17 }
 0x2a0   :  { %v385_v38 = vsel %vm94_vm1, %v359_v31, 0.0 }
 0x2a1   :  { %v386_v17 = vrot.slane %v385_v38, 4 }
 0x2a3   :  { %v387_v50 = vadd.f32 %v386_v17, %v385_v38 }
 0x2a5   :  { %v334_v28 = vpop.permute.xlu2 %333  ;;  %v388_v58 = vrot.slane %v387_v50, 2 }
 0x2a6   :  { %v360_v34 = vmul.f32 %v334_v28, %v815_v19  ;;  %v380_v19 = vadd.f32 %v379_v37, %v378_v32 }
 0x2a7   :  { %v389_v4 = vadd.f32 %v388_v58, %v387_v50 }
 0x2a8   :  { %v392_v42 = vsel %vm94_vm1, %v360_v34, 0.0  ;;  %v381_v52 = vrot.slane %v380_v19, 2 }
 0x2a9   :  { %v393_v48 = vrot.slane %v392_v42, 4  ;;  %v390_v21 = vrot.slane %v389_v4, 1 }
 0x2aa   :  { %v382_v60 = vadd.f32 %v381_v52, %v380_v19 }
 0x2ab   :  { %v394_v56 = vadd.f32 %v393_v48, %v392_v42  ;;  %v391_v31 = vadd.f32 %v390_v21, %v389_v4 }
 0x2ac   :  { %v383_v7 = vrot.slane %v382_v60, 1 }
 0x2ad   :  { %v348_v14 = vpop.permute.xlu2 %347  ;;  %v313_v39 = vpop.permute.xlu1 %312  ;;  %v395_v1 = vrot.slane %v394_v56, 2 }
 0x2ae   :  { %v357_v40 = vmul.f32 %v313_v39, %v794_v16  ;;  %v306_v41 = vpop.permute.xlu0 %305  ;;  %v362_v43 = vmul.f32 %v348_v14, %v804_v18  ;;  %v384_v24 = vadd.f32 %v383_v7, %v382_v60 }
 0x2af   :  { %v356_v44 = vmul.f32 %v306_v41, %v773_v13  ;;  %v396_v11 = vadd.f32 %v395_v1, %v394_v56 }
 0x2b0   :  { %v371_v45 = vsel %vm94_vm1, %v357_v40, 0.0  ;;  %v406_v16 = vsel %vm94_vm1, %v362_v43, 0.0  ;;  %v566_v43 = vld [vmem:[%s887_s7] ss:$0 sm:$0xff]  ;;  %s503_s7 = sshll.u32 %s888_s8, 4  ;;  %s514_s8 = sshll.u32 %s889_s9, 4  ;;  %s504_s7 = int_to_ptr.hbm [resolvable:$true] %s503_s7  ;;  %s515_s8 = int_to_ptr.hbm [resolvable:$true] %s514_s8 }
 0x2b1   :  { %v372_v46 = vrot.slane %v371_v45, 4  ;;  %v364_v47 = vsel %vm94_vm1, %v356_v44, 0.0  ;;  %v407_v18 = vrot.slane %v406_v16, 4  ;;  %v397_v28 = vrot.slane %v396_v11, 1 }
 0x2b2   :  { %v365_v49 = vrot.slane %v364_v47, 4 }
 0x2b3   :  { %v373_v51 = vadd.f32 %v372_v46, %v371_v45  ;;  %v408_v2 = vadd.f32 %v407_v18, %v406_v16 }
 0x2b4   :  { %v366_v53 = vadd.f32 %v365_v49, %v364_v47 }
 0x2b5   :  { %v374_v54 = vrot.slane %v373_v51, 2  ;;  %v341_v55 = vpop.permute.xlu1 %340 }
 0x2b6   :  { %v367_v57 = vrot.slane %v366_v53, 2  ;;  %v361_v13 = vmul.f32 %v341_v55, %v783_v15  ;;  %v409_v15 = vrot.slane %v408_v2, 2 }
 0x2b7   :  { %v375_v59 = vadd.f32 %v374_v54, %v373_v51 }
 0x2b8   :  { %v368_v61 = vadd.f32 %v367_v57, %v366_v53  ;;  %v399_v62 = vsel %vm94_vm1, %v361_v13, 0.0  ;;  %v410_v29 = vadd.f32 %v409_v15, %v408_v2 }
 0x2b9   :  { %v376_v63 = vrot.slane %v375_v59, 1  ;;  %v400_v0 = vrot.slane %v399_v62, 4 }
 0x2ba   :  { %v369_v3 = vrot.slane %v368_v61, 1  ;;  %v411_v36 = vrot.slane %v410_v29, 1 }
 0x2bb   :  { %v377_v5 = vadd.f32 %v376_v63, %v375_v59  ;;  %v401_v6 = vadd.f32 %v400_v0, %v399_v62 }
 0x2bc   :  { %v370_v8 = vadd.f32 %v369_v3, %v368_v61  ;;  %v412_v40 = vadd.f32 %v411_v36, %v410_v29 }
 0x2bd   :  { %v402_v9 = vrot.slane %v401_v6, 2  ;;  %v355_v10 = vpop.permute.xlu1 %354 }
 0x2be   :  { %v363_v12 = vmul.f32 %v355_v10, %v820_v20  ;;  %v440_v22 = vsel %vm259_vm2, %v377_v5, %v370_v8  ;;  %v398_v20 = vadd.f32 %v397_v28, %v396_v11 }
 0x2bf   :  { %v403_v23 = vadd.f32 %v402_v9, %v401_v6  ;;  %v441_v30 = vsel %vm261_vm3, %v384_v24, %v440_v22 }
 0x2c0   :  { %v413_v25 = vsel %vm94_vm1, %v363_v12, 0.0  ;;  %v442_v35 = vsel %vm263_vm4, %v391_v31, %v441_v30 }
 0x2c1   :  { %v404_v26 = vrot.slane %v403_v23, 1  ;;  %v414_v27 = vrot.slane %v413_v25, 4  ;;  %v443_v38 = vsel %vm265_vm5, %v398_v20, %v442_v35 }
 0x2c3   :  { %v415_v32 = vadd.f32 %v414_v27, %v413_v25  ;;  %v405_v33 = vadd.f32 %v404_v26, %v403_v23 }
 0x2c5   :  { %v416_v34 = vrot.slane %v415_v32, 2  ;;  %v444_v39 = vsel %vm267_vm6, %v405_v33, %v443_v38 }
 0x2c6   :  { %v445_v17 = vsel %vm269_vm7, %v412_v40, %v444_v39 }
 0x2c7   :  { %v417_v37 = vadd.f32 %v416_v34, %v415_v32 }
 0x2c9   :  { %v418_v14 = vrot.slane %v417_v37, 1 }
 0x2cb   :  { %v419_v41 = vadd.f32 %v418_v14, %v417_v37 }
 0x2cd   :  { %v446_v42 = vsel %vm271_vm8, %v419_v41, %v445_v17 }
 0x2ce   :  { %538 = vmatmul.msk.f32.vlgmr.msrb.gmra.mxu2 %vm94_vm1, %v446_v42 }
 0x351   :  { %v466_v44 = vpop.f32.mrf.mxu2 }
 0x352   :  { %v467_v19 = vadd.f32 %v566_v43, %v466_v44 }
 0x354   :  { %469 = vmax.xlane.f32.xlu0 %v467_v19 }
 0x3c7   :  { %v470_v45 = vpop.xlane.xlu0 %469 }
 0x3c8   :  { %v471_v46 = vsub.f32 %v467_v19, %v470_v45 }
 0x3ca   :  { %v472_v47 = vmul.f32 1.442695, %v471_v46 }
 0x3cc   :  { %587 = vpow2.f32 %v472_v47 }
 0x3d2   :  { %v588_v48 = vpop.eup %587 }
 0x3d3   :  { %474 = vadd.xlane.f32.xlu2 %v588_v48 }
 0x446   :  { %v475_v49 = vpop.xlane.xlu2 %474 }
 0x447   :  { %589 = vrcp.f32 %v475_v49  ;;  %v487_v54 = vand.u32 2147483648, %v475_v49  ;;  %v485_v18 = vand.u32 2147483647, %v475_v49  ;;  %vm481_vm0 = vweird.f32 %v475_v49 }
 0x448   :  { %591 = vlog2.f32 %v475_v49 }
 0x449   :  { %v488_v13 = vor.u32 1.1754944e-38, %v487_v54  ;;  %vm486_vm2 = vcmp.eq.f32.partialorder %v485_v18, 8.507059e+37 }
 0x44d   :  { %v590_v50 = vpop.eup %589 }
 0x44e   :  { %v592_v16 = vpop.eup %591  ;;  %v477_v51 = vmul.f32 %v590_v50, %v475_v49  ;;  %vm482_vm15 = vweird.f32 %v590_v50 }
 0x44f   :  { %v493_v52 = vmul.f32 0.6931472, %v592_v16  ;;  %vm483_vm1 = vmor %vm481_vm0, %vm482_vm15 }
 0x450   :  { %v478_v53 = vsub.f32 1.0, %v477_v51 }
 0x451   :  { %v494_v55 = vsub.f32 %v471_v46, %v493_v52 }
 0x452   :  { %v479_v56 = vmul.f32 %v590_v50, %v478_v53 }
 0x453   :  { %495 = vst [vmem:[#allocation5] sm:$0xff] %v494_v55 }
 0x454   :  { %v480_v57 = vadd.f32 %v590_v50, %v479_v56  ;;  %506 = dma.vmem_to_hbm [thread:$0]  %s502_s14, 128, %s504_s7, [#allocation4]  }
 0x456   :  { %v484_v58 = vsel %vm483_vm1, %v590_v50, %v480_v57 }
 0x457   :  { %v489_v59 = vsel %vm486_vm2, %v488_v13, %v484_v58 }
 0x458   :  { %v490_v60 = vmul.f32 %v588_v48, %v489_v59 }
 0x45a   :  { %491 = vst [vmem:[#allocation6] sm:$0xff] %v490_v60 }
 0x45b   :  { %517 = dma.vmem_to_hbm [thread:$0]  %s513_s17, 128, %s515_s8, [#allocation7]  }
 0x45c   :  { %667 = dma.done.wait [#allocation4], 128  }
 0x45d   :  { %668 = vsyncadd [#allocation4], 4294967168 }
 0x45e   :  { %669 = dma.done.wait [#allocation7], 128  }
 0x45f   :  { %670 = vsyncadd [#allocation7], 4294967168 }
 0x460   :  { %526 = vsyncpa [#allocation3], 1 }
 0x461   :  { %527 = vsyncpa [#allocation4], 1 }
 0x462   :  { %528 = vsyncpa [#allocation7], 1 }

</bundles_post_ra>
